<compile_context>
chip_gen: v7x
topology: tpu7x:2x2x1
jax: 0.10.0
libtpu: 0.0.40
codegen_flags: <defaults>
</compile_context>

<pallas_src>
import functools
import math

import jax
import jax.numpy as jnp
from jax import lax
from jax.experimental import pallas as pl
from jax.experimental.pallas import tpu as pltpu

EPS = 1e-5
_VMEM_LIMIT_BYTES = 32 * 1024 * 1024   # safe scoped limit on v5e/v6e/v7x
_TILE_BUDGET_BYTES = 4 * 1024 * 1024   # ~4 MiB/tile -> pass-2 dbl-buffered in+out ~16 MiB
_FUSED_MAX_BYTES = 4 * 1024 * 1024     # fused single-block path if lane-padded f32 bytes fit
_STATS_CORES = 2                       # leading "parallel" axis for the stats pass (v7x)


def _cdiv(a, b):
    return -(-a // b)


def _lane_padded(d):
    return ((d + 127) // 128) * 128


def _pack_factor(n_rows, d):
    """Rows-per-group packing P so the packed width P*D is a multiple of 128 lanes."""
    p = 128 // math.gcd(d, 128)
    if p > 1 and n_rows % p == 0:
        return p
    # TODO(synk): pad N up to a multiple of P (and slice afterwards) instead of
    # degrading to the unpacked, lane-masked layout when N % P != 0.
    return 1


def _choose_tile_rows(n_rows, d_lanes):
    """Row-tile size from a byte budget (f32 working set, lane-padded width)."""
    tr = _TILE_BUDGET_BYTES // (_lane_padded(d_lanes) * 4)
    tr = max(8, (tr // 8) * 8)           # sublane-aligned
    return n_rows if tr >= n_rows else tr


# ------------------------------- kernels -----------------------------------

def _fused_kernel(x_ref, gamma_ref, beta_ref, o_ref, *, n_rows, eps):
    """Whole problem in one VMEM block: stats + normalize + affine fused."""
    x = x_ref[...].astype(jnp.float32)
    n = jnp.float32(n_rows)
    s = jnp.sum(x, axis=0, keepdims=True)
    ss = jnp.sum(x * x, axis=0, keepdims=True)
    mean = s / n
    var = jnp.maximum(ss / n - mean * mean, 0.0)          # biased var, clamped
    scale = gamma_ref[...] * lax.rsqrt(var + eps)
    shift = beta_ref[...] - mean * scale
    o_ref[...] = (x * scale + shift).astype(o_ref.dtype)


def _stats_kernel(x_ref, sum_ref, sumsq_ref, *, tile_rows, n_valid_rows,
                  tiles_per_core):
    """Pass 1: per-lane sum / sum-of-squares, one resident accumulator per core."""
    c = pl.program_id(0)                 # "parallel" core axis
    i = pl.program_id(1)                 # "arbitrary" row-tile axis
    gt = c * tiles_per_core + i          # global row-tile index

    @pl.when(i == 0)
    def _():
        sum_ref[...] = jnp.zeros_like(sum_ref)
        sumsq_ref[...] = jnp.zeros_like(sumsq_ref)

    def _accumulate(x):
        sum_ref[...] += jnp.sum(x, axis=0, keepdims=True).reshape(sum_ref.shape)
        sumsq_ref[...] += jnp.sum(x * x, axis=0, keepdims=True).reshape(sumsq_ref.shape)

    full_tile = (gt + 1) * tile_rows <= n_valid_rows

    @pl.when(full_tile)
    def _():
        _accumulate(x_ref[...].astype(jnp.float32))

    @pl.when(jnp.logical_not(full_tile))
    def _():
        # Partial last tile / clamped duplicate tile: zero out padded rows so
        # they do not pollute the sums.
        x = x_ref[...].astype(jnp.float32)
        row = lax.broadcasted_iota(jnp.int32, x.shape, 0) + gt * tile_rows
        _accumulate(jnp.where(row < n_valid_rows, x, 0.0))


def _apply_kernel(x_ref, scale_ref, shift_ref, o_ref):
    """Pass 2: y = x * scale + shift (one FMA per element, lane-dense tiles)."""
    # TODO(synk): for bf16 inputs on v6e/v7x this FMA could stay in bf16;
    # kept in f32 for uniform numerics across generations.
    x = x_ref[...].astype(jnp.float32)
    o_ref[...] = (x * scale_ref[...] + shift_ref[...]).astype(o_ref.dtype)


# ------------------------------- wrapper -----------------------------------

def visual_batch_norm(x, gamma, beta, eps=EPS):
    """x: (B, T, D); gamma, beta: (D,). Training-mode BatchNorm1d forward."""
    B, T, D = x.shape
    N = B * T

    # ---------- Fast path: whole problem fits in one VMEM block -------------
    if N * _lane_padded(D) * 4 <= _FUSED_MAX_BYTES:
        x2d = x.reshape(N, D)
        gamma32 = gamma.astype(jnp.float32).reshape(1, D)
        beta32 = beta.astype(jnp.float32).reshape(1, D)
        out2d = pl.pallas_call(
            functools.partial(_fused_kernel, n_rows=N, eps=eps),
            out_shape=jax.ShapeDtypeStruct((N, D), x.dtype),
            grid=(1,),
            in_specs=[
                pl.BlockSpec((N, D), lambda i: (0, 0)),
                pl.BlockSpec((1, D), lambda i: (0, 0)),
                pl.BlockSpec((1, D), lambda i: (0, 0)),
            ],
            out_specs=pl.BlockSpec((N, D), lambda i: (0, 0)),
            compiler_params=pltpu.CompilerParams(
                dimension_semantics=("arbitrary",),
                vmem_limit_bytes=_VMEM_LIMIT_BYTES,
            ),
        )(x2d, gamma32, beta32)
        return out2d.reshape(B, T, D)

    # ---------- Streaming path: two passes over HBM -------------------------
    # Lane-dense packing: (N, D) -> (N/P, P*D), a free reshape of contiguous
    # bytes, so every load/store uses full 128-lane vregs (unmasked vst).
    P = _pack_factor(N, D)
    Nw, Dw = N // P, P * D
    x2d = x.reshape(Nw, Dw)

    TR = _choose_tile_rows(Nw, Dw)
    num_tiles = _cdiv(Nw, TR)
    nc = min(_STATS_CORES, num_tiles)
    tpc = _cdiv(num_tiles, nc)
    last_block = num_tiles - 1

    # Pass 1: per-lane sum / sum-of-squares, one accumulator row per core so the
    # reduction runs on both TensorCores on v7x ("parallel" outer axis).
    sum_p, sumsq_p = pl.pallas_call(
        functools.partial(_stats_kernel, tile_rows=TR, n_valid_rows=Nw,
                          tiles_per_core=tpc),
        out_shape=(
            jax.ShapeDtypeStruct((nc, 1, Dw), jnp.float32),
            jax.ShapeDtypeStruct((nc, 1, Dw), jnp.float32),
        ),
        grid=(nc, tpc),
        in_specs=[pl.BlockSpec(
            (TR, Dw), lambda c, i: (jnp.minimum(c * tpc + i, last_block), 0))],
        out_specs=(
            pl.BlockSpec((1, 1, Dw), lambda c, i: (c, 0, 0)),
            pl.BlockSpec((1, 1, Dw), lambda c, i: (c, 0, 0)),
        ),
        compiler_params=pltpu.CompilerParams(
            dimension_semantics=("parallel", "arbitrary"),
            vmem_limit_bytes=_VMEM_LIMIT_BYTES,
        ),
    )(x2d)

    # Tiny O(D) finalize: fold the per-core rows and the P packed groups, then
    # build the fused affine y = x * scale + shift.
    n = jnp.float32(N)
    sums = jnp.sum(sum_p.reshape(nc * P, D), axis=0)
    sumsq = jnp.sum(sumsq_p.reshape(nc * P, D), axis=0)
    mean = sums / n
    var = jnp.maximum(sumsq / n - mean * mean, 0.0)       # biased var, clamped
    # TODO(synk): a Welford / shifted-sum combine would track PyTorch more
    # closely when |mean| >> std; single-pass sumsq/N - mean^2 kept for speed.
    scale = gamma.astype(jnp.float32) * lax.rsqrt(var + eps)
    shift = beta.astype(jnp.float32) - mean * scale
    scale_pk = jnp.tile(scale, P).reshape(1, Dw)          # packed lane l -> channel l % D
    shift_pk = jnp.tile(shift, P).reshape(1, Dw)

    # Pass 2: lane-dense fused FMA, row-tile axis sharded across TCs on v7x.
    out2d = pl.pallas_call(
        _apply_kernel,
        out_shape=jax.ShapeDtypeStruct((Nw, Dw), x.dtype),
        grid=(num_tiles,),
        in_specs=[
            pl.BlockSpec((TR, Dw), lambda i: (i, 0)),
            pl.BlockSpec((1, Dw), lambda i: (0, 0)),
            pl.BlockSpec((1, Dw), lambda i: (0, 0)),
        ],
        out_specs=pl.BlockSpec((TR, Dw), lambda i: (i, 0)),
        compiler_params=pltpu.CompilerParams(
            dimension_semantics=("parallel",),
            vmem_limit_bytes=_VMEM_LIMIT_BYTES,
        ),
    )(x2d, scale_pk, shift_pk)

    return out2d.reshape(B, T, D)


# ------------------------------- testing -----------------------------------

def _reference(x, gamma, beta, eps=EPS):
    B, T, D = x.shape
    x2d = x.reshape(-1, D).astype(jnp.float32)
    mean = jnp.mean(x2d, axis=0, keepdims=True)
    var = jnp.mean((x2d - mean) ** 2, axis=0, keepdims=True)   # biased
    y = (x2d - mean) * lax.rsqrt(var + eps) * gamma + beta
    return y.reshape(B, T, D).astype(x.dtype)


def _run_case(B, T, D, key):
    kx, kg, kb = jax.random.split(key, 3)
    x = jax.random.normal(kx, (B, T, D), dtype=jnp.float32)
    # nn.BatchNorm1d defaults are weight=ones, bias=zeros; perturb so the
    # affine path is exercised.
    gamma = jnp.ones((D,), jnp.float32) + 0.1 * jax.random.normal(kg, (D,), jnp.float32)
    beta = 0.1 * jax.random.normal(kb, (D,), jnp.float32)

    out = jax.block_until_ready(visual_batch_norm(x, gamma, beta))
    ref = _reference(x, gamma, beta)
    assert out.shape == (B, T, D)
    err = float(jnp.max(jnp.abs(out - ref)))
    assert err < 2e-4, f"mismatch for shape {(B, T, D)}: max abs err {err}"


if __name__ == "__main__":
    key = jax.random.PRNGKey(0)
    k0, k1, k2, k3 = jax.random.split(key, 4)

    # Primary small case consistent with the module's (B, T, D) forward.
    _run_case(2, 8, 32, k0)        # fused single-call path
    # Shape coverage for the streaming / fallback paths.
    _run_case(8, 8192, 32, k1)     # streaming, packed (P=4, Dw=128), even tiles
    _run_case(3, 7001, 64, k2)     # streaming, unpacked fallback, partial + odd tiles
    _run_case(4, 8192, 48, k3)     # streaming, gcd-packed (P=8, Dw=384), partial tile

    # TODO(synk): running_mean / running_var / num_batches_tracked buffer updates
    # (training-time side effect of nn.BatchNorm1d) are not materialized; they do
    # not affect the forward output.
    print("KERNEL_OK")
</pallas_src>

<mosaic_0001>
module attributes {stable_mosaic.version = 11 : i64} {
  func.func @_fused_kernel(%arg0: i32, %arg1: memref<16x32xf32, #tpu.memory_space<vmem>>, %arg2: memref<1x32xf32, #tpu.memory_space<vmem>>, %arg3: memref<1x32xf32, #tpu.memory_space<vmem>>, %arg4: memref<16x32xf32, #tpu.memory_space<vmem>>) attributes {dimension_semantics = [#tpu.dimension_semantics<arbitrary>], iteration_bounds = array<i64: 1>, scalar_prefetch = 0 : i64, scratch_operands = 0 : i64, tpu.core_type = #tpu.core_type<tc>, window_params = [{pipeline_mode = #tpu.pipeline_mode<synchronous>, transform_indices = @transform_0, window_bounds = array<i64: 16, 32>}, {pipeline_mode = #tpu.pipeline_mode<synchronous>, transform_indices = @transform_1, window_bounds = array<i64: 1, 32>}, {pipeline_mode = #tpu.pipeline_mode<synchronous>, transform_indices = @transform_2, window_bounds = array<i64: 1, 32>}, {pipeline_mode = #tpu.pipeline_mode<synchronous>, transform_indices = @transform_3, window_bounds = array<i64: 16, 32>}]} {
    %c0 = arith.constant 0 : index
    %c0_0 = arith.constant 0 : index
    %0 = vector.load %arg1[%c0, %c0_0] : memref<16x32xf32, #tpu.memory_space<vmem>>, vector<16x32xf32>
    %cst = arith.constant dense<0.000000e+00> : vector<32xf32>
    %1 = vector.multi_reduction <add>, %0, %cst [0] : vector<16x32xf32> to vector<32xf32>
    %2 = vector.shape_cast %1 : vector<32xf32> to vector<1x32xf32>
    %3 = arith.mulf %0, %0 : vector<16x32xf32>
    %cst_1 = arith.constant dense<0.000000e+00> : vector<32xf32>
    %4 = vector.multi_reduction <add>, %3, %cst_1 [0] : vector<16x32xf32> to vector<32xf32>
    %5 = vector.shape_cast %4 : vector<32xf32> to vector<1x32xf32>
    %cst_2 = arith.constant 1.600000e+01 : f32
    %6 = vector.broadcast %cst_2 : f32 to vector<1x32xf32>
    %7 = arith.divf %2, %6 : vector<1x32xf32>
    %cst_3 = arith.constant 1.600000e+01 : f32
    %8 = vector.broadcast %cst_3 : f32 to vector<1x32xf32>
    %9 = arith.divf %5, %8 : vector<1x32xf32>
    %10 = arith.mulf %7, %7 : vector<1x32xf32>
    %11 = arith.subf %9, %10 : vector<1x32xf32>
    %cst_4 = arith.constant 0.000000e+00 : f32
    %12 = vector.broadcast %cst_4 : f32 to vector<1x32xf32>
    %13 = arith.maximumf %11, %12 : vector<1x32xf32>
    %c0_5 = arith.constant 0 : index
    %c0_6 = arith.constant 0 : index
    %14 = vector.load %arg2[%c0_5, %c0_6] : memref<1x32xf32, #tpu.memory_space<vmem>>, vector<1x32xf32>
    %cst_7 = arith.constant 9.99999974E-6 : f32
    %15 = vector.broadcast %cst_7 : f32 to vector<1x32xf32>
    %16 = arith.addf %13, %15 : vector<1x32xf32>
    %17 = math.rsqrt %16 : vector<1x32xf32>
    %18 = arith.mulf %14, %17 : vector<1x32xf32>
    %c0_8 = arith.constant 0 : index
    %c0_9 = arith.constant 0 : index
    %19 = vector.load %arg3[%c0_8, %c0_9] : memref<1x32xf32, #tpu.memory_space<vmem>>, vector<1x32xf32>
    %20 = arith.mulf %7, %18 : vector<1x32xf32>
    %21 = arith.subf %19, %20 : vector<1x32xf32>
    %22 = vector.broadcast %18 : vector<1x32xf32> to vector<16x32xf32>
    %23 = arith.mulf %0, %22 : vector<16x32xf32>
    %24 = vector.broadcast %21 : vector<1x32xf32> to vector<16x32xf32>
    %25 = arith.addf %23, %24 : vector<16x32xf32>
    %c0_10 = arith.constant 0 : index
    %c0_11 = arith.constant 0 : index
    %26 = vector.load %arg4[%c0_10, %c0_11] : memref<16x32xf32, #tpu.memory_space<vmem>>, vector<16x32xf32>
    tpu.vector_store %arg4[%c0_10, %c0_11], %25 {strides = array<i32>} : memref<16x32xf32, #tpu.memory_space<vmem>>, vector<16x32xf32>,
    return
  }
  func.func @transform_0(%arg0: i32) -> (i32, i32) {
    %c0_i32 = arith.constant 0 : i32
    %c0_i32_0 = arith.constant 0 : i32
    %c0_i32_1 = arith.constant 0 : i32
    return %c0_i32, %c0_i32_0 : i32, i32
  }
  func.func @transform_1(%arg0: i32) -> (i32, i32) {
    %c0_i32 = arith.constant 0 : i32
    %c0_i32_0 = arith.constant 0 : i32
    %c0_i32_1 = arith.constant 0 : i32
    return %c0_i32, %c0_i32_0 : i32, i32
  }
  func.func @transform_2(%arg0: i32) -> (i32, i32) {
    %c0_i32 = arith.constant 0 : i32
    %c0_i32_0 = arith.constant 0 : i32
    %c0_i32_1 = arith.constant 0 : i32
    return %c0_i32, %c0_i32_0 : i32, i32
  }
  func.func @transform_3(%arg0: i32) -> (i32, i32) {
    %c0_i32 = arith.constant 0 : i32
    %c0_i32_0 = arith.constant 0 : i32
    %c0_i32_1 = arith.constant 0 : i32
    return %c0_i32, %c0_i32_0 : i32, i32
  }
}

</mosaic_0001>

<bundles_post_ra>
// kernel: tpu_custom_call.1
= control target key start
LH: loop header
LB: loop body
LE: loop exit
PB: predicated region body
PF: predicated region fallthrough
CT: control target
= control target key end

     0   :  { %8 = vsyncpa [#allocation3], 0  ;;  %s220_s0 = inlined_call_operand.hbm [shape: f32[16,32], index: 0, kind: input, shape index: {}]   ;;  %s221_s1 = inlined_call_operand.vmem [shape: f32[1,32], index: 1, kind: input, shape index: {}]   ;;  %s222_s2 = inlined_call_operand.vmem [shape: f32[1,32], index: 2, kind: input, shape index: {}]   ;;  %s223_s3 = inlined_call_operand.hbm [shape: f32[16,32], index: 3, kind: output, shape index: {}]  }
   0x1   :  { %9 = vsyncpa [#allocation4], 0  ;;  %s154_s12 = smov [#allocation2]   ;;  %s106_s16 = scalar_lea.hbm %s220_s0, 256 }
   0x2   :  { %s15_s13 = sshll.u32 %s154_s12, 4  ;;  %p107_p0 = scmp.ne.s32.totalorder %s220_s0, %s106_s16  ;;  %s16_s13 = int_to_ptr.vmem [resolvable:$true] %s15_s13 }
   0x3   :  { %p110_p1 = scmp.lt.u32.totalorder %s106_s16, %s220_s0 }
   0x5   :  { %p112_p2 = pnand %p110_p1, %p107_p0 }
   0x7   :  { %115 = shalt.err (!%p112_p2)
}
   0x8   :  { %s116_s21 = scalar_lea.vmem %s16_s13, 256  ;;  %p121_p4 = scmp.lt.s32.totalorder %s16_s13, %s16_s13 }
   0x9   :  { %p117_p3 = scmp.ne.s32.totalorder %s16_s13, %s116_s21  ;;  %p122_p5 = scmp.lt.s32.totalorder %s116_s21, %s116_s21 }
   0xb   :  { %p123_p6 = por %p122_p5, %p121_p4 }
   0xd   :  { %p124_p7 = pnand %p123_p6, %p117_p3 }
   0xf   :  { %127 = shalt.err (!%p124_p7)
}
  0x10   :  { %s155_s22 = smov 128   ;;  %s156_s23 = smov 8  }
  0x11   :  { %21 = dma.hbm_to_vmem [thread:$0]  %s220_s0, 256, %s16_s13, [#allocation3], %s155_s22, %s155_s22, %s156_s23  }
  0x12   :  { %150 = dma.done.wait [#allocation3], 256  }
  0x13   :  { %151 = vsyncadd [#allocation3], 4294967040  ;;  %vm31_vm0 = vcmask 261120   ;;  %v29_v0 = vld [vmem:[#allocation2] sm:$0xff]  ;;  %v30_v1 = vld [vmem:[#allocation2 + $0x8] sm:$0xff]  ;;  %v66_v28 = vlaneseq  ;;  %s157_s29 = smov [#allocation5]  }
  0x14   :  { %v32_v2 = vsel %vm31_vm0, %v29_v0, 0.0  ;;  %v33_v3 = vsel %vm31_vm0, %v30_v1, 0.0  ;;  %v41_v4 = vmul.f32 %v29_v0, %v29_v0  ;;  %v42_v5 = vmul.f32 %v30_v1, %v30_v1  ;;  %v58_v30 = vld [vmem:[%s221_s1] sm:$0x1]  ;;  %s88_s30 = sshll.u32 %s157_s29, 4  ;;  %s89_s30 = int_to_ptr.vmem [resolvable:$true] %s88_s30 }
  0x15   :  { %v34_v6 = vadd.f32 %v33_v3, %v32_v2  ;;  %v67_v29 = vshrl.u32 %v66_v28, 7  ;;  %v62_v34 = vld [vmem:[%s222_s2] sm:$0x1]  ;;  %s128_s1 = scalar_lea.vmem %s89_s30, 256  ;;  %p133_p9 = scmp.lt.s32.totalorder %s89_s30, %s89_s30 }
  0x16   :  { %v43_v7 = vsel %vm31_vm0, %v41_v4, 0.0  ;;  %v44_v8 = vsel %vm31_vm0, %v42_v5, 0.0  ;;  %p129_p8 = scmp.ne.s32.totalorder %s89_s30, %s128_s1  ;;  %p134_p10 = scmp.lt.s32.totalorder %s128_s1, %s128_s1 }
  0x17   :  { %v35_v9 = vrot.slane %v34_v6, 4  ;;  %v45_v10 = vadd.f32 %v44_v8, %v43_v7  ;;  %v68_v31 = vsub.s32 0, %v67_v29 }
  0x18   :  { %p135_p11 = por %p134_p10, %p133_p9 }
  0x19   :  { %v36_v11 = vadd.f32 %v35_v9, %v34_v6  ;;  %v46_v12 = vrot.slane %v45_v10, 4 }
  0x1a   :  { %p136_p12 = pnand %p135_p11, %p129_p8 }
  0x1b   :  { %v37_v13 = vrot.slane %v36_v11, 2  ;;  %v47_v14 = vadd.f32 %v46_v12, %v45_v10 }
  0x1d   :  { %v38_v15 = vadd.f32 %v37_v13, %v36_v11  ;;  %v48_v16 = vrot.slane %v47_v14, 2 }
  0x1f   :  { %v39_v17 = vrot.slane %v38_v15, 1  ;;  %v49_v18 = vadd.f32 %v48_v16, %v47_v14 }
  0x21   :  { %v40_v19 = vadd.f32 %v39_v17, %v38_v15  ;;  %v50_v20 = vrot.slane %v49_v18, 1 }
  0x23   :  { %v51_v21 = vadd.f32 %v50_v20, %v49_v18  ;;  %v53_v22 = vmul.f32 0.0625, %v40_v19 }
  0x25   :  { %v54_v23 = vmul.f32 0.0625, %v51_v21  ;;  %v55_v24 = vmul.f32 %v53_v22, %v53_v22 }
  0x27   :  { %v56_v25 = vsub.f32 %v54_v23, %v55_v24 }
  0x29   :  { %v57_v26 = vmax.f32 %v56_v25, 0.0 }
  0x2b   :  { %v59_v27 = vadd.f32 1e-05, %v57_v26 }
  0x2d   :  { %104 = vrsqrt.f32 %v59_v27 }
  0x37   :  { %v105_v32 = vpop.eup %104 }
  0x38   :  { %v61_v33 = vmul.f32 %v105_v32, %v58_v30 }
  0x3a   :  { %v63_v35 = vmul.f32 %v61_v33, %v53_v22  ;;  %v69_v36 = vrot.slane %v61_v33, %v68_v31 }
  0x3c   :  { %v64_v37 = vsub.f32 %v62_v34, %v63_v35  ;;  %v71_v38 = vmul.f32 %v69_v36, %v29_v0  ;;  %v72_v39 = vmul.f32 %v69_v36, %v30_v1 }
  0x3e   :  { %v77_v40 = vrot.slane %v64_v37, %v68_v31 }
  0x40   :  { %v79_v41 = vadd.f32 %v77_v40, %v71_v38  ;;  %v80_v42 = vadd.f32 %v77_v40, %v72_v39 }
  0x42   :  { %81 = vst.msk [vmem:[#allocation5] sm:$0xff] %vm31_vm0, %v79_v41  ;;  %82 = vst.msk [vmem:[#allocation5 + $0x8] sm:$0xff] %vm31_vm0, %v80_v42 }
  0x43   :  { %139 = shalt.err (!%p136_p12)
}
  0x44   :  { %s140_s5 = scalar_lea.hbm %s223_s3, 256 }
  0x45   :  { %p141_p13 = scmp.ne.s32.totalorder %s223_s3, %s140_s5  ;;  %p144_p0 = scmp.lt.u32.totalorder %s140_s5, %s223_s3 }
  0x47   :  { %p146_p1 = pnand %p144_p0, %p141_p13 }
  0x49   :  { %149 = shalt.err (!%p146_p1)
}
  0x4a   :  { %94 = dma.vmem_to_hbm [thread:$0]  %s89_s30, 256, %s223_s3, [#allocation4], %s155_s22, %s155_s22, %s156_s23  }
  0x4b   :  { %152 = dma.done.wait [#allocation4], 256  }
  0x4c   :  { %153 = vsyncadd [#allocation4], 4294967040 }
  0x4d   :  { %98 = vsyncpa [#allocation3], 1 }
  0x4e   :  { %99 = vsyncpa [#allocation4], 1 }

</bundles_post_ra>
